<compile_context>
chip_gen: v7x
topology: tpu7x:2x2x1
jax: 0.10.0
libtpu: 0.0.40
codegen_flags: <defaults>
</compile_context>

<pallas_src>
import functools

import jax
import jax.numpy as jnp
from jax import lax
from jax.experimental import pallas as pl
from jax.experimental.pallas import tpu as pltpu

BN_EPS = 1e-5

_LANE = 128
_STEP_TARGET_BYTES = 1 << 20      # aim for >= ~1 MiB of x per grid step
_MAX_BATCH_BLOCK = 8              # bound for the unrolled in-kernel batch loop


def _vmem_budget_bytes():
    """(tile-sizing budget, scoped-vmem limit) derived from this chip's VMEM."""
    cap = 64 * 1024 * 1024        # v7x per-TC physical VMEM = smallest across gens
    try:
        info = pltpu.get_tpu_info()
        cap = int(getattr(info, "vmem_capacity_bytes", cap)) or cap
    except Exception:
        pass
    return int(cap * 0.55), int(cap * 0.85)


def _choose_tiling(n, c_in, c_out, l_out, in_bytes, out_bytes, budget):
    """Pick (batch_block, tile_l): lane-dense tiles sized by bytes vs VMEM budget."""
    fixed = 2 * c_out * c_in * in_bytes + 2 * c_out * 4 + (64 << 10)

    def step_bytes(b_blk, tile_l):
        x_b = 2 * b_blk * c_in * tile_l * in_bytes      # double-buffered input tile
        o_b = 2 * b_blk * c_out * tile_l * out_bytes    # double-buffered output tile
        y_b = b_blk * c_out * tile_l * 4                # f32 conv intermediate
        return fixed + x_b + o_b + y_b

    if l_out <= _LANE:
        tile_l = l_out                                  # single exact tile
    else:
        per_lane = 2 * c_in * in_bytes + 2 * c_out * out_bytes + c_out * 4
        cap_l = max(_LANE, ((budget - fixed) // per_lane // _LANE) * _LANE)
        tile_l = min((l_out // _LANE) * _LANE, cap_l)   # lane-dense multiple of 128

    b_blk = 1
    for d in range(1, min(n, _MAX_BATCH_BLOCK) + 1):
        if n % d != 0:
            continue
        if step_bytes(d, tile_l) > budget:
            break
        b_blk = d
        if d * c_in * tile_l * in_bytes >= _STEP_TARGET_BYTES:
            break
    return b_blk, tile_l


def _stats_kernel(x_ref, gram_ref, xsum_ref, *, l_out, tile_l, need_mask,
                  compute_dtype):
    # x_ref:    (b_blk, C_in, tile_l)       one batch block, one L tile
    # gram_ref: (1, C_in, C_in) f32 output, accumulated across the L (arbitrary) axis
    # xsum_ref: (1, C_in, 1)    f32 output, accumulated across the L axis
    lt = pl.program_id(1)

    @pl.when(lt == 0)
    def _():
        gram_ref[...] = jnp.zeros_like(gram_ref)
        xsum_ref[...] = jnp.zeros_like(xsum_ref)

    b_blk, c_in, _ = x_ref.shape
    if need_mask:
        col = lt * tile_l + lax.broadcasted_iota(jnp.int32, (c_in, tile_l), 1)
        valid = col < l_out

    g_acc = jnp.zeros((c_in, c_in), jnp.float32)
    s_acc = jnp.zeros((c_in, 1), jnp.float32)
    for b in range(b_blk):                              # static unrolled loop
        xb = x_ref[b]
        if need_mask:
            xb = jnp.where(valid, xb, jnp.zeros_like(xb))
        xd = xb if compute_dtype is None else xb.astype(compute_dtype)
        # MXU contraction over the lane dim:  G += X X^T  (independent of C_out).
        g_acc = g_acc + lax.dot_general(
            xd, xd, (((1,), (1,)), ((), ())), preferred_element_type=jnp.float32)
        s_acc = s_acc + jnp.sum(xb.astype(jnp.float32), axis=1, keepdims=True)

    gram_ref[...] += g_acc[None]
    xsum_ref[...] += s_acc[None]


def _normalize_kernel(w_ref, x_ref, scale_ref, offset_ref, o_ref, *, compute_dtype):
    # Recompute the 1x1 conv for this tile and apply the folded BN as one FMA.
    # w: (C_out, C_in); x: (b_blk, C_in, tile_l); scale/offset: (C_out, 1)
    w = w_ref[...]
    if compute_dtype is not None:
        w = w.astype(compute_dtype)
    s = scale_ref[...]
    off = offset_ref[...]
    for b in range(x_ref.shape[0]):                     # static unrolled loop
        xb = x_ref[b]
        if compute_dtype is not None:
            xb = xb.astype(compute_dtype)
        y = jnp.dot(w, xb, preferred_element_type=jnp.float32)
        o_ref[b] = (y * s + off).astype(o_ref.dtype)


def residual_block(x, weight, gamma, beta, stride=1, io_dtype=None,
                   compute_dtype=None):
    """Conv1d(kernel_size=1, stride, bias=False) + BatchNorm1d (batch statistics).

    x: (N, C_in, L); weight: (C_out, C_in); gamma/beta: (C_out,)
    Returns (N, C_out, L_out) with L_out = (L - 1)//stride + 1.
    """
    N, C_in, L = x.shape
    C_out = weight.shape[0]

    # kernel_size=1 conv with stride == subsampling along L. stride=1 (default)
    # takes the no-op path.
    # TODO(synk): for stride>1, fold the stride into the x DMA (strided pl.ds /
    # index_map) instead of this wrapper-side slice, which costs one extra HBM pass.
    if stride != 1:
        x = x[:, :, ::stride]
    L_out = x.shape[2]
    M = N * L_out

    if io_dtype is not None:          # opt-in bf16 I/O: halves HBM bytes on v6e/v7x
        x = x.astype(io_dtype)
        weight = weight.astype(io_dtype)
    out_dtype = x.dtype

    budget, vmem_limit = _vmem_budget_bytes()
    in_bytes = x.dtype.itemsize
    out_bytes = jnp.dtype(out_dtype).itemsize
    b_blk, tile_l = _choose_tiling(N, C_in, C_out, L_out, in_bytes, out_bytes, budget)
    grid = (N // b_blk, pl.cdiv(L_out, tile_l))
    need_mask = (L_out % tile_l) != 0

    x_spec = pl.BlockSpec((b_blk, C_in, tile_l), lambda nb, lt: (nb, 0, lt))

    # ---- Pass 1: per-batch-block partial Gram / sum of the (strided) input ----
    gram_p, xsum_p = pl.pallas_call(
        functools.partial(_stats_kernel, l_out=L_out, tile_l=tile_l,
                          need_mask=need_mask, compute_dtype=compute_dtype),
        out_shape=(jax.ShapeDtypeStruct((grid[0], C_in, C_in), jnp.float32),
                   jax.ShapeDtypeStruct((grid[0], C_in, 1), jnp.float32)),
        grid_spec=pltpu.PrefetchScalarGridSpec(
            num_scalar_prefetch=0,
            grid=grid,
            in_specs=[x_spec],
            out_specs=[pl.BlockSpec((1, C_in, C_in), lambda nb, lt: (nb, 0, 0)),
                       pl.BlockSpec((1, C_in, 1), lambda nb, lt: (nb, 0, 0))],
        ),
        compiler_params=pltpu.CompilerParams(
            dimension_semantics=("parallel", "arbitrary"),
            vmem_limit_bytes=vmem_limit),
    )(x)

    # ---- Tiny BN fold in the wrapper (O(C_in^2 * C_out) flops, f32) ----
    w32 = weight.astype(jnp.float32)
    inv_m = 1.0 / float(M)
    g = jnp.sum(gram_p, axis=0) * inv_m                 # E[x x^T]   (C_in, C_in)
    m = jnp.sum(xsum_p, axis=0) * inv_m                 # E[x]       (C_in, 1)
    cov = g - m @ m.T                                   # Cov[x]     (C_in, C_in)
    mean_y = w32 @ m                                    # (C_out, 1)
    # var_y[o] = w_o^T Cov w_o  (biased variance, matches BatchNorm normalization).
    # NOTE: single-pass f32 moments; a Welford-style combine would be more robust
    # for extreme N*L or large |mean|.
    var_y = jnp.maximum(jnp.sum((w32 @ cov) * w32, axis=1, keepdims=True), 0.0)
    inv_std = lax.rsqrt(var_y + BN_EPS)
    scale = gamma.astype(jnp.float32).reshape(C_out, 1) * inv_std
    offset = beta.astype(jnp.float32).reshape(C_out, 1) - mean_y * scale

    # ---- Pass 2: recompute conv per tile + single-FMA BN, write NCL directly ----
    # TODO(synk): for very large C_out (multi-MiB W), add a C_out grid axis here so
    # the W block and output tile shrink.
    vec_spec = pl.BlockSpec((C_out, 1), lambda nb, lt: (0, 0))
    out = pl.pallas_call(
        functools.partial(_normalize_kernel, compute_dtype=compute_dtype),
        out_shape=jax.ShapeDtypeStruct((N, C_out, L_out), out_dtype),
        grid_spec=pltpu.PrefetchScalarGridSpec(
            num_scalar_prefetch=0,
            grid=grid,
            in_specs=[pl.BlockSpec((C_out, C_in), lambda nb, lt: (0, 0)),
                      x_spec,
                      vec_spec, vec_spec],
            out_specs=pl.BlockSpec((b_blk, C_out, tile_l),
                                   lambda nb, lt: (nb, 0, lt)),
        ),
        compiler_params=pltpu.CompilerParams(
            dimension_semantics=("parallel", "parallel"),
            vmem_limit_bytes=vmem_limit),
    )(weight, x, scale, offset)
    return out


if __name__ == "__main__":
    # Small shapes consistent with the module: batch=2, in_channels=4,
    # out_channels=8, length=16, stride=1.
    N, C_in, C_out, L, stride = 2, 4, 8, 16, 1

    key = jax.random.PRNGKey(0)
    kx, kw = jax.random.split(key)

    x = jax.random.normal(kx, (N, C_in, L), dtype=jnp.float32)
    weight = jax.random.normal(kw, (C_out, C_in), dtype=jnp.float32) * 0.1
    gamma = jnp.ones((C_out,), dtype=jnp.float32)   # PyTorch BN defaults
    beta = jnp.zeros((C_out,), dtype=jnp.float32)

    out = residual_block(x, weight, gamma, beta, stride=stride)
    jax.block_until_ready(out)

    # Pure-JAX reference (conv1x1 + training-mode BatchNorm1d).
    xs = x[:, :, ::stride]
    y_ref = jnp.einsum("oc,ncl->nol", weight, xs)
    mu = jnp.mean(y_ref, axis=(0, 2), keepdims=True)
    var = jnp.mean((y_ref - mu) ** 2, axis=(0, 2), keepdims=True)
    y_ref = (y_ref - mu) * lax.rsqrt(var + BN_EPS) * gamma[None, :, None] \
        + beta[None, :, None]

    assert out.shape == (N, C_out, (L - 1) // stride + 1)
    assert jnp.allclose(out, y_ref, atol=1e-4, rtol=1e-4)
    print("KERNEL_OK")
</pallas_src>

<mosaic_0001>
module attributes {stable_mosaic.version = 11 : i64} {
  func.func @_stats_kernel(%arg0: i32, %arg1: i32, %arg2: memref<2x4x16xf32, #tpu.memory_space<vmem>>, %arg3: memref<1x4x4xf32, #tpu.memory_space<vmem>>, %arg4: memref<1x4x1xf32, #tpu.memory_space<vmem>>) attributes {dimension_semantics = [#tpu.dimension_semantics<parallel>, #tpu.dimension_semantics<arbitrary>], iteration_bounds = array<i64: 1, 1>, scalar_prefetch = 0 : i64, scratch_operands = 0 : i64, tpu.core_type = #tpu.core_type<tc>, window_params = [{transform_indices = @transform_0, window_bounds = array<i64: 2, 4, 16>}, {transform_indices = @transform_1, window_bounds = array<i64: 1, 4, 4>}, {transform_indices = @transform_2, window_bounds = array<i64: 1, 4, 1>}]} {
    %c0_i32 = arith.constant 0 : i32
    %0 = arith.cmpi eq, %arg1, %c0_i32 : i32
    %1 = arith.extui %0 : i1 to i32
    %c0_i32_0 = arith.constant 0 : i32
    %2 = arith.cmpi ne, %1, %c0_i32_0 : i32
    scf.if %2 {
      %cst_22 = arith.constant 0.000000e+00 : f32
      %27 = vector.broadcast %cst_22 : f32 to vector<1x4x4xf32>
      %c0_23 = arith.constant 0 : index
      %c0_24 = arith.constant 0 : index
      %c0_25 = arith.constant 0 : index
      %28 = vector.load %arg3[%c0_23, %c0_24, %c0_25] : memref<1x4x4xf32, #tpu.memory_space<vmem>>, vector<1x4x4xf32>
      tpu.vector_store %arg3[%c0_23, %c0_24, %c0_25], %27 {strides = array<i32>} : memref<1x4x4xf32, #tpu.memory_space<vmem>>, vector<1x4x4xf32>,
      %cst_26 = arith.constant 0.000000e+00 : f32
      %29 = vector.broadcast %cst_26 : f32 to vector<1x4x1xf32>
      %c0_27 = arith.constant 0 : index
      %c0_28 = arith.constant 0 : index
      %c0_29 = arith.constant 0 : index
      %30 = vector.load %arg4[%c0_27, %c0_28, %c0_29] : memref<1x4x1xf32, #tpu.memory_space<vmem>>, vector<1x4x1xf32>
      tpu.vector_store %arg4[%c0_27, %c0_28, %c0_29], %29 {strides = array<i32>} : memref<1x4x1xf32, #tpu.memory_space<vmem>>, vector<1x4x1xf32>,
    } else {
    }
    %cst = arith.constant 0.000000e+00 : f32
    %3 = vector.broadcast %cst : f32 to vector<4x4xf32>
    %cst_1 = arith.constant 0.000000e+00 : f32
    %4 = vector.broadcast %cst_1 : f32 to vector<4x1xf32>
    %c0 = arith.constant 0 : index
    %c0_2 = arith.constant 0 : index
    %c0_3 = arith.constant 0 : index
    %5 = vector.load %arg2[%c0, %c0_2, %c0_3] : memref<2x4x16xf32, #tpu.memory_space<vmem>>, vector<1x4x16xf32>
    %6 = vector.shape_cast %5 : vector<1x4x16xf32> to vector<4x16xf32>
    %cst_4 = arith.constant dense<0.000000e+00> : vector<4x4xf32>
    %7 = tpu.matmul %6, %6, %cst_4 {dimension_numbers = #tpu.dot_dimension_numbers<[1], [1], [0], [0], [0, 0, 1, 0], [], []>} : vector<4x16xf32>, vector<4x16xf32>, vector<4x4xf32> -> vector<4x4xf32>
    %8 = arith.addf %3, %7 : vector<4x4xf32>
    %cst_5 = arith.constant dense<0.000000e+00> : vector<4xf32>
    %9 = vector.multi_reduction <add>, %6, %cst_5 [1] : vector<4x16xf32> to vector<4xf32>
    %10 = vector.shape_cast %9 : vector<4xf32> to vector<4x1xf32>
    %11 = arith.addf %4, %10 : vector<4x1xf32>
    %c1 = arith.constant 1 : index
    %c0_6 = arith.constant 0 : index
    %c0_7 = arith.constant 0 : index
    %12 = vector.load %arg2[%c1, %c0_6, %c0_7] : memref<2x4x16xf32, #tpu.memory_space<vmem>>, vector<1x4x16xf32>
    %13 = vector.shape_cast %12 : vector<1x4x16xf32> to vector<4x16xf32>
    %cst_8 = arith.constant dense<0.000000e+00> : vector<4x4xf32>
    %14 = tpu.matmul %13, %13, %cst_8 {dimension_numbers = #tpu.dot_dimension_numbers<[1], [1], [0], [0], [0, 0, 1, 0], [], []>} : vector<4x16xf32>, vector<4x16xf32>, vector<4x4xf32> -> vector<4x4xf32>
    %15 = arith.addf %8, %14 : vector<4x4xf32>
    %cst_9 = arith.constant dense<0.000000e+00> : vector<4xf32>
    %16 = vector.multi_reduction <add>, %13, %cst_9 [1] : vector<4x16xf32> to vector<4xf32>
    %17 = vector.shape_cast %16 : vector<4xf32> to vector<4x1xf32>
    %18 = arith.addf %11, %17 : vector<4x1xf32>
    %c0_10 = arith.constant 0 : index
    %c0_11 = arith.constant 0 : index
    %c0_12 = arith.constant 0 : index
    %19 = vector.load %arg3[%c0_10, %c0_11, %c0_12] : memref<1x4x4xf32, #tpu.memory_space<vmem>>, vector<1x4x4xf32>
    %20 = vector.shape_cast %15 : vector<4x4xf32> to vector<1x4x4xf32>
    %21 = arith.addf %19, %20 : vector<1x4x4xf32>
    %c0_13 = arith.constant 0 : index
    %c0_14 = arith.constant 0 : index
    %c0_15 = arith.constant 0 : index
    %22 = vector.load %arg3[%c0_13, %c0_14, %c0_15] : memref<1x4x4xf32, #tpu.memory_space<vmem>>, vector<1x4x4xf32>
    tpu.vector_store %arg3[%c0_13, %c0_14, %c0_15], %21 {strides = array<i32>} : memref<1x4x4xf32, #tpu.memory_space<vmem>>, vector<1x4x4xf32>,
    %c0_16 = arith.constant 0 : index
    %c0_17 = arith.constant 0 : index
    %c0_18 = arith.constant 0 : index
    %23 = vector.load %arg4[%c0_16, %c0_17, %c0_18] : memref<1x4x1xf32, #tpu.memory_space<vmem>>, vector<1x4x1xf32>
    %24 = vector.shape_cast %18 : vector<4x1xf32> to vector<1x4x1xf32>
    %25 = arith.addf %23, %24 : vector<1x4x1xf32>
    %c0_19 = arith.constant 0 : index
    %c0_20 = arith.constant 0 : index
    %c0_21 = arith.constant 0 : index
    %26 = vector.load %arg4[%c0_19, %c0_20, %c0_21] : memref<1x4x1xf32, #tpu.memory_space<vmem>>, vector<1x4x1xf32>
    tpu.vector_store %arg4[%c0_19, %c0_20, %c0_21], %25 {strides = array<i32>} : memref<1x4x1xf32, #tpu.memory_space<vmem>>, vector<1x4x1xf32>,
    return
  }
  func.func @transform_0(%arg0: i32, %arg1: i32) -> (i32, i32, i32) {
    %c0_i32 = arith.constant 0 : i32
    %c0_i32_0 = arith.constant 0 : i32
    return %arg0, %c0_i32, %arg1 : i32, i32, i32
  }
  func.func @transform_1(%arg0: i32, %arg1: i32) -> (i32, i32, i32) {
    %c0_i32 = arith.constant 0 : i32
    %c0_i32_0 = arith.constant 0 : i32
    %c0_i32_1 = arith.constant 0 : i32
    return %arg0, %c0_i32, %c0_i32_0 : i32, i32, i32
  }
  func.func @transform_2(%arg0: i32, %arg1: i32) -> (i32, i32, i32) {
    %c0_i32 = arith.constant 0 : i32
    %c0_i32_0 = arith.constant 0 : i32
    %c0_i32_1 = arith.constant 0 : i32
    return %arg0, %c0_i32, %c0_i32_0 : i32, i32, i32
  }
}

</mosaic_0001>

<bundles_post_ra>
// kernel: tpu_custom_call.1
= control target key start
LH: loop header
LB: loop body
LE: loop exit
PB: predicated region body
PF: predicated region fallthrough
CT: control target
= control target key end

     0   :  { %8 = vsyncpa [#allocation3], 0  ;;  %s347_s0 = inlined_call_operand.hbm [shape: f32[2,4,16], index: 0, kind: input, shape index: {}]   ;;  %s348_s1 = inlined_call_operand.hbm [shape: f32[1,4,4], index: 1, kind: output, shape index: {0}]   ;;  %s349_s2 = inlined_call_operand.vmem [shape: f32[1,4,1], index: 2, kind: output, shape index: {1}]  }
   0x1   :  { %9 = vsyncpa [#allocation4], 0  ;;  %s291_s9 = smov [#allocation2]   ;;  %s243_s13 = scalar_lea.hbm %s347_s0, 128 }
   0x2   :  { %s15_s10 = sshll.u32 %s291_s9, 4  ;;  %p244_p0 = scmp.ne.s32.totalorder %s347_s0, %s243_s13  ;;  %s16_s10 = int_to_ptr.vmem [resolvable:$true] %s15_s10 }
   0x3   :  { %p247_p1 = scmp.lt.u32.totalorder %s243_s13, %s347_s0 }
   0x5   :  { %p249_p2 = pnand %p247_p1, %p244_p0 }
   0x7   :  { %252 = shalt.err (!%p249_p2)
}
   0x8   :  { %s253_s18 = scalar_lea.vmem %s16_s10, 128  ;;  %p258_p4 = scmp.lt.s32.totalorder %s16_s10, %s16_s10 }
   0x9   :  { %p254_p3 = scmp.ne.s32.totalorder %s16_s10, %s253_s18  ;;  %p259_p5 = scmp.lt.s32.totalorder %s253_s18, %s253_s18 }
   0xb   :  { %p260_p6 = por %p259_p5, %p258_p4 }
   0xd   :  { %p261_p7 = pnand %p260_p6, %p254_p3 }
   0xf   :  { %264 = shalt.err (!%p261_p7)
}
  0x10   :  { %s292_s19 = smov 64   ;;  %s293_s20 = smov 4  }
  0x11   :  { %21 = dma.hbm_to_vmem [thread:$0]  %s347_s0, 128, %s16_s10, [#allocation3], %s292_s19, %s292_s19, %s293_s20  }
  0x12   :  { %287 = dma.done.wait [#allocation3], 128  }
  0x13   :  { %288 = vsyncadd [#allocation3], 4294967168  ;;  %vm29_vm0 = vcmask 27648   ;;  %v294_v0 = vmov 0.0   ;;  %vm295_vm1 = vmmov 0   ;;  %vm41_vm2 = vcmask 130048  }
  0x14   :  { %30 = vst.msk [vmem:[#allocation5] sm:$0xf] %vm29_vm0, %v294_v0  ;;  %227 = vmatprep.subr.mxu0 %v294_v0  ;;  %232 = vmatprep.subr.mxu1 %v294_v0  ;;  %vm34_vm3 = vcmask 125952   ;;  %v40_v1 = vld [vmem:[#allocation2 + $0x4] sm:$0xf]  ;;  %vm31_vm4 = vcmask 3072  }
  0x15   :  { %229 = vmatprep.mubr.msk.f32.mxu0 %vm295_vm1, %v294_v0  ;;  %234 = vmatprep.mubr.msk.f32.mxu1 %vm295_vm1, %v294_v0  ;;  %v33_v2 = vld [vmem:[#allocation2] sm:$0xf]  ;;  %v188_v4 = vsel %vm34_vm3, %v40_v1, 0.0  ;;  %32 = vst.msk [vmem:[%s349_s2] sm:$0xf] %vm31_vm4, %v294_v0  ;;  %s296_s28 = smov [#allocation5]  }
  0x16   :  { %228 = vmatpush3.xpose.msk.msra.mxu0 %vm41_vm2, %v40_v1  ;;  %233 = vmatpush3.xpose.msk.msra.mxu1 %vm41_vm2, %v33_v2  ;;  %v35_v3 = vsel %vm34_vm3, %v33_v2, 0.0  ;;  %s206_s29 = sshll.u32 %s296_s28, 4  ;;  %s207_s29 = int_to_ptr.vmem [resolvable:$true] %s206_s29 }
  0x17   :  { %36 = vadd.xlane.f32.xlu0 %v35_v3  ;;  %s265_s30 = scalar_lea.vmem %s207_s29, 64  ;;  %p270_p9 = scmp.lt.s32.totalorder %s207_s29, %s207_s29 }
  0x18   :  { %p266_p8 = scmp.ne.s32.totalorder %s207_s29, %s265_s30  ;;  %p271_p10 = scmp.lt.s32.totalorder %s265_s30, %s265_s30 }
  0x19   :  { %230 = vmatmul.mubr.msk.f32.vlgmr.msra.gmra.mrb[0].mxu0 %vm41_vm2, %v40_v1  ;;  %235 = vmatmul.mubr.msk.f32.vlgmr.msra.gmra.mrb[0].mxu1 %vm41_vm2, %v33_v2 }
  0x1a   :  { %p272_p11 = por %p271_p10, %p270_p9 }
  0x1b   :  { %189 = vadd.xlane.f32.xlu0 %v188_v4  ;;  %v192_v12 = vld [vmem:[#allocation5] sm:$0xf] }
  0x1c   :  { %v196_v7 = vld [vmem:[%s349_s2] sm:$0xf]  ;;  %p273_p12 = pnand %p272_p11, %p266_p8 }
  0xa4   :  { %v37_v5 = vpop.xlane.xlu0 %36 }
  0xa8   :  { %v190_v6 = vpop.xlane.xlu0 %189 }
  0xa9   :  { %v191_v8 = vadd.f32 %v190_v6, %v37_v5 }
  0xab   :  { %v197_v9 = vadd.f32 %v196_v7, %v191_v8 }
  0xad   :  { %199 = vst.msk [vmem:[%s349_s2] sm:$0xf] %vm31_vm4, %v197_v9 }
  0xec   :  { %v111_v10 = vpop.f32.mrb[0].mxu0  ;;  %v184_v11 = vpop.f32.mrb[0].mxu1 }
  0xed   :  { %v185_v13 = vadd.f32 %v184_v11, %v111_v10  ;;  %v231_v14 = vpop.f32.mrb[1].mxu0  ;;  %v236_v15 = vpop.f32.mrb[1].mxu1 }
  0xef   :  { %v193_v16 = vadd.f32 %v192_v12, %v185_v13 }
  0xf1   :  { %195 = vst.msk [vmem:[#allocation5] sm:$0xf] %vm29_vm0, %v193_v16 }
  0xf2   :  { %276 = shalt.err (!%p273_p12)
}
  0xf3   :  { %s277_s4 = scalar_lea.hbm %s348_s1, 64 }
  0xf4   :  { %p278_p13 = scmp.ne.s32.totalorder %s348_s1, %s277_s4  ;;  %p281_p0 = scmp.lt.u32.totalorder %s277_s4, %s348_s1 }
  0xf6   :  { %p283_p1 = pnand %p281_p0, %p278_p13 }
  0xf8   :  { %286 = shalt.err (!%p283_p1)
}
  0xf9   :  { %209 = dma.vmem_to_hbm [thread:$0]  %s207_s29, 64, %s348_s1, [#allocation4]  }
  0xfa   :  { %289 = dma.done.wait [#allocation4], 64  }
  0xfb   :  { %290 = vsyncadd [#allocation4], 4294967232 }
  0xfc   :  { %217 = vsyncpa [#allocation3], 1 }
  0xfd   :  { %218 = vsyncpa [#allocation4], 1 }

</bundles_post_ra>
